<compile_context>
chip_gen: v7x
topology: tpu7x:2x2x1
jax: 0.10.0
libtpu: 0.0.40
codegen_flags: <defaults>
</compile_context>

<pallas_src>
import jax
import jax.numpy as jnp
from jax.experimental import pallas as pl
from jax.experimental.pallas import tpu as pltpu


def se_block_kernel(x_ref, w1_ref, b1_ref, w2_ref, b2_ref, o_ref):
    # Per grid step (TB images):
    #   x_ref/o_ref: (TB, C, HW)  -- C on sublanes, HW on lanes
    #   w1_ref: (C, Cr)  fc1 weight transposed, 1/HW mean folded in
    #   b1_ref: (1, Cr)
    #   w2_ref: (C, Cr)
    #   b2_ref: (C, 1)
    x = x_ref[...]                                                # native dtype

    # Squeeze: sum-pool over the spatial (lane) axis, f32 accumulation.
    # (For bf16 inputs a chunked accumulation would avoid any f32 tile temp;
    #  for f32 inputs this is already copy-free.)
    pooled = jnp.sum(x, axis=-1, keepdims=True, dtype=jnp.float32)  # (TB, C, 1)

    # fc1 + ReLU on the VPU: h[b, r] = relu(sum_c pooled[b, c] * W1t[c, r] + b1[r])
    h = jnp.sum(pooled * w1_ref[...], axis=1, keepdims=True) + b1_ref[...]  # (TB, 1, Cr)
    h = jnp.maximum(h, 0.0)

    # fc2 + sigmoid: gate[b, c] = sigmoid(sum_r h[b, r] * W2[c, r] + b2[c])
    y = jnp.sum(h * w2_ref[...], axis=-1, keepdims=True) + b2_ref[...]      # (TB, C, 1)
    gate = jax.nn.sigmoid(y).astype(x.dtype)

    # Excite: broadcast the per-(image, channel) gate across the spatial lanes.
    o_ref[...] = x * gate


def se_block(x, w1, b1, w2, b2, *, target_block_bytes=2 << 20):
    """x: (B, C, H, W) NCHW.
    w1: (Cr, C), b1: (Cr,), w2: (C, Cr), b2: (C,)
    (PyTorch nn.Linear weight layout: (out_features, in_features))."""
    B, C, H, W = x.shape
    Cr = w1.shape[0]
    HW = H * W

    # Flatten spatial dims only (free bitcast for contiguous NCHW); no lane
    # padding -- blocks span the full (C, HW) trailing dims, so a non-128
    # HW just costs a masked store on the last partial vreg per row.
    x3 = x.reshape(B, C, HW)

    itemsize = jnp.dtype(x.dtype).itemsize
    bytes_per_image = C * HW * itemsize

    # Batch TB images per grid step so each block is ~1-4 MiB.
    tb = max(1, min(B, target_block_bytes // max(1, bytes_per_image)))
    # Prefer an even step count when multi-block so both v7x TensorCores get
    # an equal share (grid axis is "parallel"); fall back to the original TB
    # if no even split exists.
    nb = pl.cdiv(B, tb)
    if nb > 1 and nb % 2 == 1:
        for cand in range(tb - 1, 0, -1):
            if pl.cdiv(B, cand) % 2 == 0:
                tb = cand
                break
    nb = pl.cdiv(B, tb)

    # Tiny MLP params in the kernel's layout (f32; a few hundred bytes, so
    # bandwidth is irrelevant and they stay VMEM-resident across steps).
    w1_k = (w1.T / HW).astype(jnp.float32)        # (C, Cr), mean folded into fc1
    b1_k = b1.reshape(1, Cr).astype(jnp.float32)  # (1, Cr)
    w2_k = w2.astype(jnp.float32)                 # (C, Cr)
    b2_k = b2.reshape(C, 1).astype(jnp.float32)   # (C, 1)

    out3 = pl.pallas_call(
        se_block_kernel,
        out_shape=jax.ShapeDtypeStruct((B, C, HW), x.dtype),
        grid=(nb,),
        in_specs=[
            pl.BlockSpec((tb, C, HW), lambda i: (i, 0, 0)),
            pl.BlockSpec((C, Cr), lambda i: (0, 0)),
            pl.BlockSpec((1, Cr), lambda i: (0, 0)),
            pl.BlockSpec((C, Cr), lambda i: (0, 0)),
            pl.BlockSpec((C, 1), lambda i: (0, 0)),
        ],
        out_specs=pl.BlockSpec((tb, C, HW), lambda i: (i, 0, 0)),
        compiler_params=pltpu.CompilerParams(
            dimension_semantics=("parallel",)),
    )(x3, w1_k, b1_k, w2_k, b2_k)

    return out3.reshape(B, C, H, W)


def se_block_ref(x, w1, b1, w2, b2):
    """Pure-JAX reference matching the PyTorch forward."""
    pooled = jnp.mean(x, axis=(2, 3))                 # adaptive_avg_pool2d(x, 1)
    h = jnp.maximum(pooled @ w1.T + b1, 0.0)
    y = jax.nn.sigmoid(h @ w2.T + b2)
    return x * y[:, :, None, None]


if __name__ == "__main__":
    # Shapes consistent with SEBlock(channels=32, reduction=16); HW = 196 is
    # deliberately not a multiple of 128 to exercise the unpadded store path.
    B, C, H, W = 2, 32, 14, 14
    reduction = 16
    Cr = C // reduction

    key = jax.random.PRNGKey(0)
    kx, k1, k2, k3, k4, kx2 = jax.random.split(key, 6)

    x = jax.random.normal(kx, (B, C, H, W), dtype=jnp.float32)

    # Deterministic nn.Linear-style init (uniform +-1/sqrt(fan_in)).
    lim1 = 1.0 / jnp.sqrt(C)
    lim2 = 1.0 / jnp.sqrt(Cr)
    w1 = jax.random.uniform(k1, (Cr, C), jnp.float32, -lim1, lim1)
    b1 = jax.random.uniform(k2, (Cr,), jnp.float32, -lim1, lim1)
    w2 = jax.random.uniform(k3, (C, Cr), jnp.float32, -lim2, lim2)
    b2 = jax.random.uniform(k4, (C,), jnp.float32, -lim2, lim2)

    out = se_block(x, w1, b1, w2, b2)
    out = jax.block_until_ready(out)

    ref = se_block_ref(x, w1, b1, w2, b2)
    assert out.shape == (B, C, H, W)
    assert jnp.allclose(out, ref, atol=1e-5, rtol=1e-5)

    # Also exercise the multi-step / partial-last-block path (B=3 with TB=2:
    # grid=(2,), the second block has one valid image, writeback is masked).
    B2, H2 = 3, 7
    x_b = jax.random.normal(kx2, (B2, C, H2, H2), dtype=jnp.float32)
    out_b = se_block(x_b, w1, b1, w2, b2,
                     target_block_bytes=2 * C * H2 * H2 * 4)
    out_b = jax.block_until_ready(out_b)
    ref_b = se_block_ref(x_b, w1, b1, w2, b2)
    assert jnp.allclose(out_b, ref_b, atol=1e-5, rtol=1e-5)

    print("KERNEL_OK")
</pallas_src>

<mosaic_0001>
module attributes {stable_mosaic.version = 11 : i64} {
  func.func @se_block_kernel(%arg0: i32, %arg1: memref<2x32x196xf32, #tpu.memory_space<vmem>>, %arg2: memref<32x2xf32, #tpu.memory_space<vmem>>, %arg3: memref<1x2xf32, #tpu.memory_space<vmem>>, %arg4: memref<32x2xf32, #tpu.memory_space<vmem>>, %arg5: memref<32x1xf32, #tpu.memory_space<vmem>>, %arg6: memref<2x32x196xf32, #tpu.memory_space<vmem>>) attributes {dimension_semantics = [#tpu.dimension_semantics<parallel>], iteration_bounds = array<i64: 1>, scalar_prefetch = 0 : i64, scratch_operands = 0 : i64, tpu.core_type = #tpu.core_type<tc>, window_params = [{transform_indices = @transform_0, window_bounds = array<i64: 2, 32, 196>}, {pipeline_mode = #tpu.pipeline_mode<synchronous>, transform_indices = @transform_1, window_bounds = array<i64: 32, 2>}, {pipeline_mode = #tpu.pipeline_mode<synchronous>, transform_indices = @transform_2, window_bounds = array<i64: 1, 2>}, {pipeline_mode = #tpu.pipeline_mode<synchronous>, transform_indices = @transform_3, window_bounds = array<i64: 32, 2>}, {pipeline_mode = #tpu.pipeline_mode<synchronous>, transform_indices = @transform_4, window_bounds = array<i64: 32, 1>}, {transform_indices = @transform_5, window_bounds = array<i64: 2, 32, 196>}]} {
    %c0 = arith.constant 0 : index
    %c0_0 = arith.constant 0 : index
    %c0_1 = arith.constant 0 : index
    %0 = vector.load %arg1[%c0, %c0_0, %c0_1] : memref<2x32x196xf32, #tpu.memory_space<vmem>>, vector<2x32x196xf32>
    %cst = arith.constant dense<0.000000e+00> : vector<2x32xf32>
    %1 = vector.multi_reduction <add>, %0, %cst [2] : vector<2x32x196xf32> to vector<2x32xf32>
    %2 = vector.shape_cast %1 : vector<2x32xf32> to vector<2x32x1xf32>
    %c0_2 = arith.constant 0 : index
    %c0_3 = arith.constant 0 : index
    %3 = vector.load %arg2[%c0_2, %c0_3] : memref<32x2xf32, #tpu.memory_space<vmem>>, vector<32x2xf32>
    %4 = vector.shape_cast %3 : vector<32x2xf32> to vector<1x32x2xf32>
    %5 = vector.broadcast %2 : vector<2x32x1xf32> to vector<2x32x2xf32>
    %6 = vector.broadcast %4 : vector<1x32x2xf32> to vector<2x32x2xf32>
    %7 = arith.mulf %5, %6 : vector<2x32x2xf32>
    %cst_4 = arith.constant dense<0.000000e+00> : vector<2x2xf32>
    %8 = vector.multi_reduction <add>, %7, %cst_4 [1] : vector<2x32x2xf32> to vector<2x2xf32>
    %9 = vector.shape_cast %8 : vector<2x2xf32> to vector<2x1x2xf32>
    %c0_5 = arith.constant 0 : index
    %c0_6 = arith.constant 0 : index
    %10 = vector.load %arg3[%c0_5, %c0_6] : memref<1x2xf32, #tpu.memory_space<vmem>>, vector<1x2xf32>
    %11 = vector.shape_cast %10 : vector<1x2xf32> to vector<1x1x2xf32>
    %12 = vector.broadcast %11 : vector<1x1x2xf32> to vector<2x1x2xf32>
    %13 = arith.addf %9, %12 : vector<2x1x2xf32>
    %cst_7 = arith.constant 0.000000e+00 : f32
    %14 = vector.broadcast %cst_7 : f32 to vector<2x1x2xf32>
    %15 = arith.maximumf %13, %14 : vector<2x1x2xf32>
    %c0_8 = arith.constant 0 : index
    %c0_9 = arith.constant 0 : index
    %16 = vector.load %arg4[%c0_8, %c0_9] : memref<32x2xf32, #tpu.memory_space<vmem>>, vector<32x2xf32>
    %17 = vector.shape_cast %16 : vector<32x2xf32> to vector<1x32x2xf32>
    %18 = vector.broadcast %15 : vector<2x1x2xf32> to vector<2x32x2xf32>
    %19 = vector.broadcast %17 : vector<1x32x2xf32> to vector<2x32x2xf32>
    %20 = arith.mulf %18, %19 : vector<2x32x2xf32>
    %cst_10 = arith.constant dense<0.000000e+00> : vector<2x32xf32>
    %21 = vector.multi_reduction <add>, %20, %cst_10 [2] : vector<2x32x2xf32> to vector<2x32xf32>
    %22 = vector.shape_cast %21 : vector<2x32xf32> to vector<2x32x1xf32>
    %c0_11 = arith.constant 0 : index
    %c0_12 = arith.constant 0 : index
    %23 = vector.load %arg5[%c0_11, %c0_12] : memref<32x1xf32, #tpu.memory_space<vmem>>, vector<32x1xf32>
    %24 = vector.shape_cast %23 : vector<32x1xf32> to vector<1x32x1xf32>
    %25 = vector.broadcast %24 : vector<1x32x1xf32> to vector<2x32x1xf32>
    %26 = arith.addf %22, %25 : vector<2x32x1xf32>
    %27 = arith.negf %26 : vector<2x32x1xf32>
    %28 = math.exp %27 : vector<2x32x1xf32>
    %cst_13 = arith.constant 1.000000e+00 : f32
    %29 = vector.broadcast %cst_13 : f32 to vector<2x32x1xf32>
    %30 = arith.addf %29, %28 : vector<2x32x1xf32>
    %31 = arith.divf %29, %30 : vector<2x32x1xf32>
    %32 = vector.broadcast %31 : vector<2x32x1xf32> to vector<2x32x196xf32>
    %33 = arith.mulf %0, %32 : vector<2x32x196xf32>
    %c0_14 = arith.constant 0 : index
    %c0_15 = arith.constant 0 : index
    %c0_16 = arith.constant 0 : index
    %34 = vector.load %arg6[%c0_14, %c0_15, %c0_16] : memref<2x32x196xf32, #tpu.memory_space<vmem>>, vector<2x32x196xf32>
    tpu.vector_store %arg6[%c0_14, %c0_15, %c0_16], %33 {strides = array<i32>} : memref<2x32x196xf32, #tpu.memory_space<vmem>>, vector<2x32x196xf32>,
    return
  }
  func.func @transform_0(%arg0: i32) -> (i32, i32, i32) {
    %c0_i32 = arith.constant 0 : i32
    %c0_i32_0 = arith.constant 0 : i32
    %c0_i32_1 = arith.constant 0 : i32
    return %arg0, %c0_i32, %c0_i32_0 : i32, i32, i32
  }
  func.func @transform_1(%arg0: i32) -> (i32, i32) {
    %c0_i32 = arith.constant 0 : i32
    %c0_i32_0 = arith.constant 0 : i32
    %c0_i32_1 = arith.constant 0 : i32
    return %c0_i32, %c0_i32_0 : i32, i32
  }
  func.func @transform_2(%arg0: i32) -> (i32, i32) {
    %c0_i32 = arith.constant 0 : i32
    %c0_i32_0 = arith.constant 0 : i32
    %c0_i32_1 = arith.constant 0 : i32
    return %c0_i32, %c0_i32_0 : i32, i32
  }
  func.func @transform_3(%arg0: i32) -> (i32, i32) {
    %c0_i32 = arith.constant 0 : i32
    %c0_i32_0 = arith.constant 0 : i32
    %c0_i32_1 = arith.constant 0 : i32
    return %c0_i32, %c0_i32_0 : i32, i32
  }
  func.func @transform_4(%arg0: i32) -> (i32, i32) {
    %c0_i32 = arith.constant 0 : i32
    %c0_i32_0 = arith.constant 0 : i32
    %c0_i32_1 = arith.constant 0 : i32
    return %c0_i32, %c0_i32_0 : i32, i32
  }
  func.func @transform_5(%arg0: i32) -> (i32, i32, i32) {
    %c0_i32 = arith.constant 0 : i32
    %c0_i32_0 = arith.constant 0 : i32
    %c0_i32_1 = arith.constant 0 : i32
    return %arg0, %c0_i32, %c0_i32_0 : i32, i32, i32
  }
}

</mosaic_0001>

<bundles_post_ra>
// kernel: tpu_custom_call.1
= control target key start
LH: loop header
LB: loop body
LE: loop exit
PB: predicated region body
PF: predicated region fallthrough
CT: control target
= control target key end

     0   :  { %10 = vsyncpa [#allocation3], 0  ;;  %s616_s0 = inlined_call_operand.hbm [shape: f32[2,32,196], index: 0, kind: input, shape index: {}]   ;;  %s617_s1 = inlined_call_operand.vmem [shape: f32[32,2], index: 1, kind: input, shape index: {}]   ;;  %s618_s2 = inlined_call_operand.vmem [shape: f32[1,2], index: 2, kind: input, shape index: {}]   ;;  %s619_s3 = inlined_call_operand.vmem [shape: f32[32,2], index: 3, kind: input, shape index: {}]   ;;  %s620_s4 = inlined_call_operand.vmem [shape: f32[32,1], index: 4, kind: input, shape index: {}]   ;;  %s621_s5 = inlined_call_operand.hbm [shape: f32[2,32,196], index: 5, kind: output, shape index: {}]  }
   0x1   :  { %11 = vsyncpa [#allocation4], 0  ;;  %s416_s18 = smov [#allocation2]   ;;  %s368_s22 = scalar_lea.hbm %s616_s0, 2048 }
   0x2   :  { %s17_s19 = sshll.u32 %s416_s18, 4  ;;  %p369_p0 = scmp.ne.s32.totalorder %s616_s0, %s368_s22  ;;  %s18_s19 = int_to_ptr.vmem [resolvable:$true] %s17_s19 }
   0x3   :  { %p372_p1 = scmp.lt.u32.totalorder %s368_s22, %s616_s0 }
   0x5   :  { %p374_p2 = pnand %p372_p1, %p369_p0 }
   0x7   :  { %377 = shalt.err (!%p374_p2)
}
   0x8   :  { %s378_s27 = scalar_lea.vmem %s18_s19, 2048  ;;  %p383_p4 = scmp.lt.s32.totalorder %s18_s19, %s18_s19 }
   0x9   :  { %p379_p3 = scmp.ne.s32.totalorder %s18_s19, %s378_s27  ;;  %p384_p5 = scmp.lt.s32.totalorder %s378_s27, %s378_s27 }
   0xb   :  { %p385_p6 = por %p384_p5, %p383_p4 }
   0xd   :  { %p386_p7 = pnand %p385_p6, %p379_p3 }
   0xf   :  { %389 = shalt.err (!%p386_p7)
}
  0x10   :  { %s417_s28 = smov 256   ;;  %s418_s29 = smov 16  }
  0x11   :  { %23 = dma.hbm_to_vmem [thread:$0]  %s616_s0, 2048, %s18_s19, [#allocation3], %s417_s28, %s417_s28, %s418_s29  }
  0x12   :  { %412 = dma.done.wait [#allocation3], 2048  }
  0x13   :  { %413 = vsyncadd [#allocation3], 4294965248  ;;  %vm51_vm0 = vcmask 556032   ;;  %v466_v0 = vld [vmem:[#allocation2 + $0x40] sm:$0xff]  ;;  %v468_v1 = vld [vmem:[#allocation2 + $0x48] sm:$0xff]  ;;  %vm96_vm1 = vcmask 15360  }
  0x14   :  { %v470_v2 = vld [vmem:[#allocation2] sm:$0xff]  ;;  %v68_v3 = vsel %vm51_vm0, %v468_v1, 0.0  ;;  %v474_v4 = vld [vmem:[#allocation2 + $0x8] sm:$0xff]  ;;  %v476_v5 = vld [vmem:[#allocation2 + $0x50] sm:$0xff] }
  0x15   :  { %v478_v6 = vld [vmem:[#allocation2 + $0x58] sm:$0xff]  ;;  %v69_v7 = vadd.f32 %v68_v3, %v466_v0  ;;  %v52_v8 = vsel %vm51_vm0, %v474_v4, 0.0  ;;  %v485_v10 = vld [vmem:[#allocation2 + $0x10] sm:$0xff]  ;;  %v492_v14 = vld [vmem:[#allocation2 + $0x68] sm:$0xff] }
  0x16   :  { %v72_v9 = vsel %vm51_vm0, %v478_v6, 0.0  ;;  %v487_v11 = vld [vmem:[#allocation2 + $0x18] sm:$0xff]  ;;  %v53_v12 = vadd.f32 %v52_v8, %v470_v2  ;;  %v494_v15 = vld [vmem:[#allocation2 + $0x28] sm:$0xff]  ;;  %v498_v18 = vld [vmem:[#allocation2 + $0x60] sm:$0xff]  ;;  %v76_v19 = vsel %vm51_vm0, %v492_v14, 0.0 }
  0x17   :  { %v56_v13 = vsel %vm51_vm0, %v487_v11, 0.0  ;;  %70 = vadd.xlane.f32.xlu1 %v69_v7  ;;  %v73_v16 = vadd.f32 %v72_v9, %v476_v5  ;;  %v502_v20 = vld [vmem:[#allocation2 + $0x20] sm:$0xff]  ;;  %v60_v21 = vsel %vm51_vm0, %v494_v15, 0.0  ;;  %v506_v22 = vld [vmem:[#allocation2 + $0x78] sm:$0xff]  ;;  %v77_v24 = vadd.f32 %v76_v19, %v498_v18  ;;  %v512_v26 = vld [vmem:[#allocation2 + $0x70] sm:$0xff] }
  0x18   :  { %54 = vadd.xlane.f32.xlu0 %v53_v12  ;;  %v57_v17 = vadd.f32 %v56_v13, %v485_v10  ;;  %v508_v23 = vld [vmem:[#allocation2 + $0x38] sm:$0xff]  ;;  %v61_v25 = vadd.f32 %v60_v21, %v502_v20  ;;  %v80_v27 = vsel %vm51_vm0, %v506_v22, 0.0  ;;  %v516_v28 = vld [vmem:[#allocation2 + $0x30] sm:$0xff]  ;;  %v84_v32 = vld [vmem:[%s617_s1] sm:$0xff]  ;;  %v132_v19 = vlaneseq }
  0x19   :  { %v64_v29 = vsel %vm51_vm0, %v508_v23, 0.0  ;;  %v81_v30 = vadd.f32 %v80_v27, %v512_v26  ;;  %v85_v36 = vld [vmem:[%s617_s1 + $0x8] sm:$0xff]  ;;  %v86_v43 = vld [vmem:[%s617_s1 + $0x10] sm:$0xff]  ;;  %v87_v51 = vld [vmem:[%s617_s1 + $0x18] sm:$0xff] }
  0x1a   :  { %v65_v31 = vadd.f32 %v64_v29, %v516_v28  ;;  %v123_v27 = vld [vmem:[%s618_s2] sm:$0x1] }
  0x1b   :  { %74 = vadd.xlane.f32.xlu1 %v73_v16 }
  0x1c   :  { %58 = vadd.xlane.f32.xlu0 %v57_v17 }
  0x1f   :  { %78 = vadd.xlane.f32.xlu1 %v77_v24 }
  0x20   :  { %62 = vadd.xlane.f32.xlu0 %v61_v25 }
  0x23   :  { %82 = vadd.xlane.f32.xlu1 %v81_v30  ;;  %v133_v30 = vshrl.u32 %v132_v19, 7 }
  0x24   :  { %66 = vadd.xlane.f32.xlu0 %v65_v31 }
  0xa4   :  { %v71_v33 = vpop.xlane.xlu1 %70 }
  0xa5   :  { %v92_v34 = vmul.f32 %v84_v32, %v71_v33  ;;  %v55_v35 = vpop.xlane.xlu0 %54 }
  0xa6   :  { %v88_v44 = vmul.f32 %v84_v32, %v55_v35  ;;  %v134_v35 = vsub.s32 0, %v133_v30 }
  0xa7   :  { %v110_v38 = vsel %vm96_vm1, %v92_v34, 0.0 }
  0xa8   :  { %v75_v37 = vpop.xlane.xlu1 %74  ;;  %v97_v53 = vsel %vm96_vm1, %v88_v44, 0.0 }
  0xa9   :  { %v93_v39 = vmul.f32 %v85_v36, %v75_v37  ;;  %v59_v40 = vpop.xlane.xlu0 %58 }
  0xaa   :  { %v89_v41 = vmul.f32 %v85_v36, %v59_v40 }
  0xab   :  { %v111_v42 = vsel %vm96_vm1, %v93_v39, 0.0  ;;  %v128_v39 = vld [vmem:[%s619_s3] sm:$0xff] }
  0xac   :  { %v112_v45 = vadd.f32 %v111_v42, %v110_v38  ;;  %v79_v46 = vpop.xlane.xlu1 %78  ;;  %v98_v49 = vsel %vm96_vm1, %v89_v41, 0.0  ;;  %v129_v38 = vld [vmem:[%s619_s3 + $0x8] sm:$0xff]  ;;  %v131_v41 = vld [vmem:[%s619_s3 + $0x18] sm:$0xff]  ;;  %v130_v42 = vld [vmem:[%s619_s3 + $0x10] sm:$0xff] }
  0xad   :  { %v94_v47 = vmul.f32 %v86_v43, %v79_v46  ;;  %v63_v48 = vpop.xlane.xlu0 %62  ;;  %v99_v57 = vadd.f32 %v98_v49, %v97_v53 }
  0xae   :  { %v90_v50 = vmul.f32 %v86_v43, %v63_v48 }
  0xaf   :  { %v113_v52 = vsel %vm96_vm1, %v94_v47, 0.0 }
  0xb0   :  { %v114_v54 = vadd.f32 %v113_v52, %v112_v45  ;;  %v100_v55 = vsel %vm96_vm1, %v90_v50, 0.0  ;;  %v83_v56 = vpop.xlane.xlu1 %82 }
  0xb1   :  { %v95_v58 = vmul.f32 %v87_v51, %v83_v56  ;;  %v67_v59 = vpop.xlane.xlu0 %66  ;;  %v101_v61 = vadd.f32 %v100_v55, %v99_v57 }
  0xb2   :  { %v91_v60 = vmul.f32 %v87_v51, %v67_v59 }
  0xb3   :  { %v115_v62 = vsel %vm96_vm1, %v95_v58, 0.0 }
  0xb4   :  { %v116_v63 = vadd.f32 %v115_v62, %v114_v54  ;;  %v102_v3 = vsel %vm96_vm1, %v91_v60, 0.0  ;;  %v419_v60 = vmov 0   ;;  %v172_v62 = vld [vmem:[%s620_s4] sm:$0xff] }
  0xb5   :  { %v103_v7 = vadd.f32 %v102_v3, %v101_v61  ;;  %335 = vset.pattern.permute.xlu1 %v419_v60  ;;  %334 = vset.pattern.permute.xlu0 %v419_v60  ;;  %v173_v61 = vld [vmem:[%s620_s4 + $0x8] sm:$0xff] }
  0xb6   :  { %v117_v8 = vrot.slane %v116_v63, 4 }
  0xb7   :  { %v104_v9 = vrot.slane %v103_v7, 4 }
  0xb8   :  { %v118_v12 = vadd.f32 %v117_v8, %v116_v63 }
  0xb9   :  { %v105_v13 = vadd.f32 %v104_v9, %v103_v7  ;;  %v175_v9 = vld [vmem:[%s620_s4 + $0x18] sm:$0xff] }
  0xba   :  { %v119_v16 = vrot.slane %v118_v12, 2 }
  0xbb   :  { %v106_v17 = vrot.slane %v105_v13, 2 }
  0xbc   :  { %v120_v21 = vadd.f32 %v119_v16, %v118_v12  ;;  %v174_v12 = vld [vmem:[%s620_s4 + $0x10] sm:$0xff]  ;;  %s420_s4 = smov [#allocation5]  }
  0xbd   :  { %v107_v24 = vadd.f32 %v106_v17, %v105_v13  ;;  %s309_s6 = sshll.u32 %s420_s4, 4  ;;  %s310_s6 = int_to_ptr.vmem [resolvable:$true] %s309_s6 }
  0xbe   :  { %v121_v25 = vrot.slane %v120_v21, 1  ;;  %s390_s0 = scalar_lea.vmem %s310_s6, 2048  ;;  %p395_p9 = scmp.lt.s32.totalorder %s310_s6, %s310_s6 }
  0xbf   :  { %v108_v29 = vrot.slane %v107_v24, 1  ;;  %p391_p8 = scmp.ne.s32.totalorder %s310_s6, %s390_s0  ;;  %p396_p10 = scmp.lt.s32.totalorder %s390_s0, %s390_s0 }
  0xc0   :  { %v122_v31 = vadd.f32 %v121_v25, %v120_v21 }
  0xc1   :  { %v109_v32 = vadd.f32 %v108_v29, %v107_v24  ;;  %p397_p11 = por %p396_p10, %p395_p9 }
  0xc2   :  { %v125_v33 = vadd.f32 %v123_v27, %v122_v31 }
  0xc3   :  { %v124_v34 = vadd.f32 %v123_v27, %v109_v32  ;;  %p398_p12 = pnand %p397_p11, %p391_p8 }
  0xc4   :  { %v127_v37 = vmax.f32 %v125_v33, 0.0 }
  0xc5   :  { %v126_v36 = vmax.f32 %v124_v34, 0.0 }
  0xc6   :  { %v139_v45 = vrot.slane %v127_v37, %v134_v35 }
  0xc7   :  { %v135_v40 = vrot.slane %v126_v36, %v134_v35 }
  0xc8   :  { %v145_v52 = vmul.f32 %v139_v45, %v129_v38  ;;  %v144_v53 = vmul.f32 %v139_v45, %v128_v39  ;;  %v147_v56 = vmul.f32 %v139_v45, %v131_v41  ;;  %v146_v57 = vmul.f32 %v139_v45, %v130_v42 }
  0xc9   :  { %v141_v43 = vmul.f32 %v135_v40, %v129_v38  ;;  %v140_v44 = vmul.f32 %v135_v40, %v128_v39  ;;  %v143_v48 = vmul.f32 %v135_v40, %v131_v41  ;;  %v142_v49 = vmul.f32 %v135_v40, %v130_v42 }
  0xca   :  { %v163_v54 = vsel %vm96_vm1, %v145_v52, 0.0  ;;  %v160_v55 = vsel %vm96_vm1, %v144_v53, 0.0  ;;  %v169_v58 = vsel %vm96_vm1, %v147_v56, 0.0  ;;  %v166_v59 = vsel %vm96_vm1, %v146_v57, 0.0 }
  0xcb   :  { %v151_v46 = vsel %vm96_vm1, %v141_v43, 0.0  ;;  %v148_v47 = vsel %vm96_vm1, %v140_v44, 0.0  ;;  %v157_v50 = vsel %vm96_vm1, %v143_v48, 0.0  ;;  %v154_v51 = vsel %vm96_vm1, %v142_v49, 0.0 }
  0xcc   :  { %152 = vadd.xlane.f32.xlu1 %v151_v46  ;;  %149 = vadd.xlane.f32.xlu0 %v148_v47 }
  0xd0   :  { %158 = vadd.xlane.f32.xlu1 %v157_v50  ;;  %155 = vadd.xlane.f32.xlu0 %v154_v51 }
  0xd4   :  { %164 = vadd.xlane.f32.xlu1 %v163_v54  ;;  %161 = vadd.xlane.f32.xlu0 %v160_v55 }
  0xd8   :  { %170 = vadd.xlane.f32.xlu1 %v169_v58  ;;  %167 = vadd.xlane.f32.xlu0 %v166_v59 }
 0x159   :  { %v153_v63 = vpop.xlane.xlu1 %152  ;;  %v150_v3 = vpop.xlane.xlu0 %149 }
 0x15a   :  { %v177_v7 = vadd.f32 %v173_v61, %v153_v63  ;;  %v176_v8 = vadd.f32 %v172_v62, %v150_v3 }
 0x15c   :  { %v322_v13 = vmul.f32 -1.442695, %v177_v7  ;;  %v321_v16 = vmul.f32 -1.442695, %v176_v8 }
 0x15d   :  { %v159_v17 = vpop.xlane.xlu1 %158  ;;  %v156_v19 = vpop.xlane.xlu0 %155 }
 0x15e   :  { %336 = vpow2.f32 %v322_v13  ;;  %v179_v21 = vadd.f32 %v175_v9, %v159_v17  ;;  %v178_v24 = vadd.f32 %v174_v12, %v156_v19 }
 0x15f   :  { %338 = vpow2.f32 %v321_v16 }
 0x160   :  { %v324_v25 = vmul.f32 -1.442695, %v179_v21  ;;  %v323_v27 = vmul.f32 -1.442695, %v178_v24 }
 0x161   :  { %v165_v29 = vpop.xlane.xlu1 %164  ;;  %v162_v30 = vpop.xlane.xlu0 %161 }
 0x162   :  { %340 = vpow2.f32 %v324_v25  ;;  %v181_v31 = vadd.f32 %v173_v61, %v165_v29  ;;  %v180_v32 = vadd.f32 %v172_v62, %v162_v30 }
 0x163   :  { %342 = vpow2.f32 %v323_v27 }
 0x164   :  { %v325_v33 = vmul.f32 -1.442695, %v180_v32  ;;  %v326_v35 = vmul.f32 -1.442695, %v181_v31 }
 0x165   :  { %v168_v34 = vpop.xlane.xlu0 %167  ;;  %v171_v38 = vpop.xlane.xlu1 %170 }
 0x166   :  { %344 = vpow2.f32 %v325_v33  ;;  %v182_v36 = vadd.f32 %v174_v12, %v168_v34  ;;  %v183_v42 = vadd.f32 %v175_v9, %v171_v38 }
 0x167   :  { %346 = vpow2.f32 %v326_v35 }
 0x168   :  { %v337_v37 = vpop.eup %336  ;;  %v327_v43 = vmul.f32 -1.442695, %v182_v36  ;;  %v328_v47 = vmul.f32 -1.442695, %v183_v42 }
 0x169   :  { %v339_v39 = vpop.eup %338  ;;  %v209_v40 = vadd.f32 1.0, %v337_v37 }
 0x16a   :  { %v208_v41 = vadd.f32 1.0, %v339_v39 }
 0x16b   :  { %348 = vrcp.f32 %v209_v40 }
 0x16c   :  { %v341_v44 = vpop.eup %340  ;;  %350 = vrcp.f32 %v208_v41 }
 0x16d   :  { %v343_v45 = vpop.eup %342  ;;  %352 = vpow2.f32 %v327_v43  ;;  %v211_v48 = vadd.f32 1.0, %v341_v44 }
 0x16e   :  { %v210_v46 = vadd.f32 1.0, %v343_v45 }
 0x170   :  { %354 = vrcp.f32 %v210_v46  ;;  %v345_v49 = vpop.eup %344 }
 0x171   :  { %356 = vpow2.f32 %v328_v47  ;;  %v347_v50 = vpop.eup %346  ;;  %v212_v51 = vadd.f32 1.0, %v345_v49 }
 0x172   :  { %358 = vrcp.f32 %v211_v48  ;;  %v213_v54 = vadd.f32 1.0, %v347_v50 }
 0x173   :  { %360 = vrcp.f32 %v212_v51 }
 0x174   :  { %362 = vrcp.f32 %v213_v54 }
 0x175   :  { %v349_v52 = vpop.eup %348 }
 0x176   :  { %v351_v53 = vpop.eup %350  ;;  %239 = vperm.xlu1 %335, %v349_v52  }
 0x177   :  { %234 = vperm.xlu0 %334, %v351_v53   ;;  %v353_v55 = vpop.eup %352 }
 0x178   :  { %v214_v57 = vadd.f32 1.0, %v353_v55 }
 0x17a   :  { %v355_v56 = vpop.eup %354  ;;  %364 = vrcp.f32 %v214_v57 }
 0x17b   :  { %244 = vperm.xlu1 %335, %v355_v56   ;;  %v357_v58 = vpop.eup %356 }
 0x17c   :  { %v359_v59 = vpop.eup %358  ;;  %v215_v60 = vadd.f32 1.0, %v357_v58 }
 0x17d   :  { %v361_v61 = vpop.eup %360 }
 0x17e   :  { %366 = vrcp.f32 %v215_v60  ;;  %v363_v62 = vpop.eup %362 }
 0x17f   :  { %249 = vperm.xlu1 %335, %v359_v59  }
 0x183   :  { %254 = vperm.xlu1 %335, %v361_v61  }
 0x184   :  { %v365_v63 = vpop.eup %364 }
 0x187   :  { %259 = vperm.xlu1 %335, %v363_v62  }
 0x188   :  { %v367_v3 = vpop.eup %366 }
 0x18b   :  { %264 = vperm.xlu1 %335, %v365_v63  }
 0x18f   :  { %269 = vperm.xlu1 %335, %v367_v3  }
 0x1f5   :  { %v240_v7 = vpop.permute.xlu1 %239 }
 0x1f6   :  { %v274_v8 = vmul.f32 %v240_v7, %v485_v10  ;;  %v275_v9 = vmul.f32 %v240_v7, %v487_v11  ;;  %v235_v12 = vpop.permute.xlu0 %234 }
 0x1f7   :  { %v272_v13 = vmul.f32 %v235_v12, %v470_v2  ;;  %v273_v16 = vmul.f32 %v235_v12, %v474_v4 }
 0x1f8   :  { %290 = vst [vmem:[#allocation5 + $0x10] sm:$0xff] %v274_v8  ;;  %291 = vst.msk [vmem:[#allocation5 + $0x18] sm:$0xff] %vm51_vm0, %v275_v9 }
 0x1f9   :  { %288 = vst [vmem:[#allocation5] sm:$0xff] %v272_v13  ;;  %289 = vst.msk [vmem:[#allocation5 + $0x8] sm:$0xff] %vm51_vm0, %v273_v16 }
 0x1fa   :  { %v245_v17 = vpop.permute.xlu1 %244 }
 0x1fb   :  { %v276_v19 = vmul.f32 %v245_v17, %v502_v20  ;;  %v277_v21 = vmul.f32 %v245_v17, %v494_v15 }
 0x1fd   :  { %292 = vst [vmem:[#allocation5 + $0x20] sm:$0xff] %v276_v19  ;;  %293 = vst.msk [vmem:[#allocation5 + $0x28] sm:$0xff] %vm51_vm0, %v277_v21 }
 0x1fe   :  { %v250_v10 = vpop.permute.xlu1 %249 }
 0x1ff   :  { %v278_v11 = vmul.f32 %v250_v10, %v516_v28  ;;  %v279_v2 = vmul.f32 %v250_v10, %v508_v23 }
 0x201   :  { %294 = vst [vmem:[#allocation5 + $0x30] sm:$0xff] %v278_v11  ;;  %295 = vst.msk [vmem:[#allocation5 + $0x38] sm:$0xff] %vm51_vm0, %v279_v2 }
 0x202   :  { %v255_v4 = vpop.permute.xlu1 %254 }
 0x203   :  { %v280_v24 = vmul.f32 %v255_v4, %v466_v0  ;;  %v281_v25 = vmul.f32 %v255_v4, %v468_v1 }
 0x205   :  { %296 = vst [vmem:[#allocation5 + $0x40] sm:$0xff] %v280_v24  ;;  %297 = vst.msk [vmem:[#allocation5 + $0x48] sm:$0xff] %vm51_vm0, %v281_v25 }
 0x206   :  { %v260_v15 = vpop.permute.xlu1 %259 }
 0x207   :  { %v282_v20 = vmul.f32 %v260_v15, %v476_v5  ;;  %v283_v27 = vmul.f32 %v260_v15, %v478_v6 }
 0x209   :  { %298 = vst [vmem:[#allocation5 + $0x50] sm:$0xff] %v282_v20  ;;  %299 = vst.msk [vmem:[#allocation5 + $0x58] sm:$0xff] %vm51_vm0, %v283_v27 }
 0x20a   :  { %v265_v23 = vpop.permute.xlu1 %264 }
 0x20b   :  { %v284_v28 = vmul.f32 %v265_v23, %v498_v18  ;;  %v285_v29 = vmul.f32 %v265_v23, %v492_v14 }
 0x20d   :  { %300 = vst [vmem:[#allocation5 + $0x60] sm:$0xff] %v284_v28  ;;  %301 = vst.msk [vmem:[#allocation5 + $0x68] sm:$0xff] %vm51_vm0, %v285_v29 }
 0x20e   :  { %v270_v0 = vpop.permute.xlu1 %269 }
 0x20f   :  { %v286_v1 = vmul.f32 %v270_v0, %v512_v26  ;;  %v287_v5 = vmul.f32 %v270_v0, %v506_v22 }
 0x211   :  { %302 = vst [vmem:[#allocation5 + $0x70] sm:$0xff] %v286_v1  ;;  %303 = vst.msk [vmem:[#allocation5 + $0x78] sm:$0xff] %vm51_vm0, %v287_v5 }
 0x212   :  { %401 = shalt.err (!%p398_p12)
}
 0x213   :  { %s402_s9 = scalar_lea.hbm %s621_s5, 2048 }
 0x214   :  { %p403_p13 = scmp.ne.s32.totalorder %s621_s5, %s402_s9  ;;  %p406_p0 = scmp.lt.u32.totalorder %s402_s9, %s621_s5 }
 0x216   :  { %p408_p1 = pnand %p406_p0, %p403_p13 }
 0x218   :  { %411 = shalt.err (!%p408_p1)
}
 0x219   :  { %315 = dma.vmem_to_hbm [thread:$0]  %s310_s6, 2048, %s621_s5, [#allocation4], %s417_s28, %s417_s28, %s418_s29  }
 0x21a   :  { %414 = dma.done.wait [#allocation4], 2048  }
 0x21b   :  { %415 = vsyncadd [#allocation4], 4294965248 }
 0x21c   :  { %319 = vsyncpa [#allocation3], 1 }
 0x21d   :  { %320 = vsyncpa [#allocation4], 1 }

</bundles_post_ra>
